<compile_context>
chip_gen: v5e
topology: v5e:2x2
jax: 0.10.0
libtpu: 0.0.40
codegen_flags: <defaults>
</compile_context>

<pallas_src>
import functools

import jax
import jax.numpy as jnp
from jax import lax
from jax.experimental import pallas as pl
from jax.experimental.pallas import tpu as pltpu

_EPS = 1e-6


def _cdiv(a, b):
    return -(-a // b)


def _round_up(a, b):
    return _cdiv(a, b) * b


def _sublane_align(itemsize):
    if itemsize >= 4:
        return 8
    if itemsize == 2:
        return 16
    return 32


def _combined_block_budget_bytes():
    """Single-buffer byte budget for all input blocks of one grid step.

    ~4 MiB on v6e/v7x (elementwise HBM roofline is ~86%+ there), ~2 MiB on v5e
    so the 2x double-buffered footprint stays well inside the 16 MiB default
    scoped VMEM.
    """
    kind = ""
    try:
        kind = jax.devices()[0].device_kind.lower()
    except Exception:
        pass
    if "v5 lite" in kind or "v5e" in kind or "v5litepod" in kind:
        return 2 << 20
    return 4 << 20


# ----------------------------------------------------------------------------
# Fused kernel: for each image n (and row-split s), accumulate
#   num_i = sum(|a_i - b_i| * mask)   for every map i, and   den = sum(mask)
# over row tiles into tiny (acc_rows, lane) f32 scratch; reduce + store once.
# ----------------------------------------------------------------------------
def _make_fused_kernel(c_used, block_rows, lane, total_rows, t_per_split,
                       acc_rows, needs_row_mask):
    num_maps = len(c_used)

    def _fold(x):
        # x: (block_rows, lane) f32 -> (acc_rows, lane). Pure VPU vreg adds
        # (reshape splits the sublane axis along its native 8-row tiling).
        if block_rows == acc_rows:
            return x
        return jnp.sum(x.reshape(block_rows // acc_rows, acc_rows, lane), axis=0)

    def kernel(*refs):
        a_refs = [refs[2 * i] for i in range(num_maps)]
        b_refs = [refs[2 * i + 1] for i in range(num_maps)]
        m_ref = refs[2 * num_maps]
        num_refs = [refs[2 * num_maps + 1 + i] for i in range(num_maps)]
        den_ref = refs[3 * num_maps + 1]
        acc_refs = [refs[3 * num_maps + 2 + i] for i in range(num_maps)]
        macc_ref = refs[4 * num_maps + 2]

        s = pl.program_id(1)
        t = pl.program_id(2)

        @pl.when(t == 0)
        def _():
            for acc in acc_refs:
                acc[...] = jnp.zeros_like(acc)
            macc_ref[...] = jnp.zeros_like(macc_ref)

        m = m_ref[...].astype(jnp.float32).reshape(block_rows, lane)
        if needs_row_mask:
            row0 = (s * t_per_split + t) * block_rows
            rows = row0 + lax.broadcasted_iota(jnp.int32, (block_rows, lane), 0)
            valid = rows < total_rows
            m = jnp.where(valid, m, 0.0)

        macc_ref[...] += _fold(m)

        for i in range(num_maps):
            d = jnp.abs(a_refs[i][...].astype(jnp.float32)
                        - b_refs[i][...].astype(jnp.float32))
            d = jnp.sum(d, axis=1).reshape(block_rows, lane)  # channel sum: VPU
            p = d * m                                         # mask already f32
            if needs_row_mask:
                p = jnp.where(valid, p, 0.0)                  # NaN-safe padding
            acc_refs[i][...] += _fold(p)

        @pl.when(t == pl.num_programs(2) - 1)
        def _():
            for i in range(num_maps):
                num_refs[i][...] = jnp.sum(acc_refs[i][...]).reshape(1, 1, 1, 1)
            den_ref[...] = jnp.sum(macc_ref[...]).reshape(1, 1, 1, 1)

    return kernel


@functools.partial(jax.jit, static_argnames=("c_used",))
def _fused_masked_l1(mask, *ab, c_used):
    """Masked L1 for several maps sharing one mask (mask read from HBM once).

    ab = (a_0, b_0, a_1, b_1, ...); a_i/b_i: (N, C_i, H, W); mask: (N, 1, H, W).
    Only channels [0, c_used[i]) of map i contribute (normal_loss_xy_only).
    Returns per-map losses: sum(|a_i-b_i|*mask) / (c_used[i]*sum(mask) + 1e-6).
    """
    num_maps = len(c_used)
    assert len(ab) == 2 * num_maps and num_maps >= 1
    a_list = list(ab[0::2])
    b_list = list(ab[1::2])
    n, _, h, w = a_list[0].shape

    # ---- lane-dense layout: flatten H*W onto a (rows, 128) grid when possible
    if (h * w) % 128 == 0:
        lane = 128
        rows = (h * w) // 128
        a_list = [a.reshape(n, a.shape[1], rows, lane) for a in a_list]
        b_list = [b.reshape(n, b.shape[1], rows, lane) for b in b_list]
        mask = mask.reshape(n, 1, rows, lane)
    else:  # fallback: tile H, full (possibly narrow) W on the lane axis
        lane = w
        rows = h

    itemsizes = [jnp.dtype(x.dtype).itemsize for x in (*a_list, *b_list, mask)]
    align = max(_sublane_align(sz) for sz in itemsizes)

    # ---- block-row selection using PADDED VMEM bytes (lane -> 128 multiple)
    lane_padded = _round_up(lane, 128)
    bytes_per_row = lane_padded * jnp.dtype(mask.dtype).itemsize
    for a, b, c in zip(a_list, b_list, c_used):
        bytes_per_row += c * lane_padded * (jnp.dtype(a.dtype).itemsize
                                            + jnp.dtype(b.dtype).itemsize)
    max_rows = max(1, _combined_block_budget_bytes() // bytes_per_row)
    if rows <= max_rows:
        tr = rows
    else:
        tr = max(align, (max_rows // align) * align)
        if tr >= rows:
            tr = rows
    n_tiles = _cdiv(rows, tr)

    # ---- explicit 2-way split of the row-tile axis when there are too few
    #      parallel blocks (keeps both v7x TensorCores busy at small batch).
    split = 1
    if n * n_tiles < 4:
        split = 2
        if n_tiles == 1 and rows > align:
            tr_half = _round_up(_cdiv(rows, 2), align)
            if tr_half < rows:
                tr = tr_half
                n_tiles = _cdiv(rows, tr)
    t_per = _cdiv(n_tiles, split)

    needs_row_mask = (split * t_per * tr) != rows
    last_block = n_tiles - 1
    acc_rows = 8 if (tr % 8 == 0) else tr

    def _in_idx(i, s, t):
        # Clamp fully-out-of-range padding tiles back into the array; the
        # in-kernel row-validity mask zeroes their contribution.
        return (i, 0, jnp.minimum(s * t_per + t, last_block), 0)

    def _out_idx(i, s, t):
        return (i, s, 0, 0)

    in_specs, operands = [], []
    for a, b, c in zip(a_list, b_list, c_used):
        spec = pl.BlockSpec((1, c, tr, lane), _in_idx)  # channel slice [0, c)
        in_specs += [spec, spec]
        operands += [a, b]
    in_specs.append(pl.BlockSpec((1, 1, tr, lane), _in_idx))
    operands.append(mask)

    out_specs = [pl.BlockSpec((1, 1, 1, 1), _out_idx) for _ in range(num_maps + 1)]
    out_shape = tuple(jax.ShapeDtypeStruct((n, split, 1, 1), jnp.float32)
                      for _ in range(num_maps + 1))
    scratch_shapes = [pltpu.VMEM((acc_rows, lane), jnp.float32)
                      for _ in range(num_maps + 1)]

    kernel = _make_fused_kernel(tuple(c_used), tr, lane, rows, t_per,
                                acc_rows, needs_row_mask)

    outs = pl.pallas_call(
        kernel,
        out_shape=out_shape,
        grid_spec=pltpu.PrefetchScalarGridSpec(
            num_scalar_prefetch=0,
            grid=(n, split, t_per),
            in_specs=in_specs,
            out_specs=out_specs,
            scratch_shapes=scratch_shapes),
        compiler_params=pltpu.CompilerParams(
            dimension_semantics=("parallel", "parallel", "arbitrary")),
    )(*operands)

    den = jnp.sum(outs[-1])
    losses = []
    for i in range(num_maps):
        num_i = jnp.sum(outs[i])
        losses.append(num_i / (den * jnp.float32(c_used[i]) + jnp.float32(_EPS)))
    return tuple(losses)


def masked_l1_loss(a, b, mask, num_channels=None):
    """Single-map masked L1 loss.  a, b: (N, C, H, W); mask: (N, 1, H, W)."""
    c_used = a.shape[1] if num_channels is None else min(num_channels, a.shape[1])
    (loss,) = _fused_masked_l1(mask, a, b, c_used=(int(c_used),))
    return loss


# ----------------------------------------------------------------------------
# Criterion (forward pass only) — mirrors the PyTorch module's control flow
# ----------------------------------------------------------------------------
class Criterion:
    def __init__(self, normal_weight=1, albedo_weight=1, rough_weight=1,
                 record_scale_loss=True, normal_loss_xy_only=True):
        self.normal_weight = normal_weight
        self.albedo_weight = albedo_weight
        self.rough_weight = rough_weight
        self.record_scale_loss = record_scale_loss
        self.normal_loss_xy_only = normal_loss_xy_only
        self._compute_jit = jax.jit(self._compute)

    # kept for API parity with the original module (un-fused per-map path)
    def list_L1_loss(self, a_s, b_s, masks, num_channels=None):
        losses = []
        loss = jnp.float32(0.0)
        for a, b, mask in zip(a_s, b_s, masks):
            loss_i = masked_l1_loss(a, b, mask, num_channels=num_channels)
            loss = loss + loss_i
            losses.append(loss_i)
        return loss, losses

    def _compute(self, output, target):
        have = [k for k in ('normal', 'albedo', 'rough') if k in target]
        per_map = {k: [] for k in have}

        if have:
            for s, mask in enumerate(target['mask']):
                names, c_used, ab = [], [], []
                for k in have:
                    c_full = output[k][s].shape[1]
                    c = 2 if (k == 'normal' and self.normal_loss_xy_only) else c_full
                    names.append(k)
                    c_used.append(min(c, c_full))
                    ab += [output[k][s], target[k][s]]
                # one fused pallas_call per scale: mask streamed & summed once
                losses_s = _fused_masked_l1(mask, *ab, c_used=tuple(c_used))
                for k, l in zip(names, losses_s):
                    per_map[k].append(l)

        weights = {'normal': self.normal_weight, 'albedo': self.albedo_weight,
                   'rough': self.rough_weight}
        loss = jnp.float32(0.0)
        pending = {}
        for k in ('normal', 'albedo', 'rough'):
            if k not in per_map:
                continue
            total = per_map[k][0]
            for l in per_map[k][1:]:
                total = total + l
            loss = loss + weights[k] * total
            pending[k + '_loss'] = total
            if self.record_scale_loss:
                pending[k + '_loss_scale'] = per_map[k]
        pending['loss'] = loss
        return loss, pending

    def forward(self, output, target):
        loss, pending = self._compute_jit(output, target)
        host = jax.device_get(pending)                   # single device sync
        loss_dict = jax.tree_util.tree_map(float, host)  # lists stay lists
        return loss, loss_dict

    __call__ = forward


# ----------------------------------------------------------------------------
if __name__ == "__main__":
    key = jax.random.PRNGKey(0)
    N, H, W = 2, 16, 16
    scales = [(H, W), (H // 2, W // 2)]  # exercises lane-dense + fallback paths

    keys = jax.random.split(key, 32)
    ki = iter(keys)

    def randn(shape):
        return jax.random.normal(next(ki), shape, dtype=jnp.float32)

    output = {'normal': [], 'albedo': [], 'rough': []}
    target = {'normal': [], 'albedo': [], 'rough': [], 'mask': []}

    for (h, w) in scales:
        output['normal'].append(randn((N, 3, h, w)))
        target['normal'].append(randn((N, 3, h, w)))
        output['albedo'].append(randn((N, 3, h, w)))
        target['albedo'].append(randn((N, 3, h, w)))
        output['rough'].append(randn((N, 1, h, w)))
        target['rough'].append(randn((N, 1, h, w)))
        mask = (jax.random.uniform(next(ki), (N, 1, h, w)) > 0.3).astype(jnp.float32)
        target['mask'].append(mask)

    criterion = Criterion()
    loss, loss_dict = criterion(output, target)
    jax.block_until_ready(loss)

    # sanity check against a pure-JAX reference
    def ref_l1(a, b, m):
        mb = jnp.broadcast_to(m, a.shape)
        return jnp.sum(jnp.abs(a - b) * mb) / (jnp.sum(mb) + _EPS)

    ref = {'normal': 0.0, 'albedo': 0.0, 'rough': 0.0}
    for s in range(len(scales)):
        m = target['mask'][s]
        ref['normal'] += float(ref_l1(output['normal'][s][:, 0:2],
                                      target['normal'][s][:, 0:2], m))
        ref['albedo'] += float(ref_l1(output['albedo'][s], target['albedo'][s], m))
        ref['rough'] += float(ref_l1(output['rough'][s], target['rough'][s], m))
    ref_loss = ref['normal'] + ref['albedo'] + ref['rough']

    assert abs(float(loss) - ref_loss) < 1e-3, (float(loss), ref_loss)
    assert abs(loss_dict['loss'] - ref_loss) < 1e-3
    for k in ('normal', 'albedo', 'rough'):
        assert abs(loss_dict[k + '_loss'] - ref[k]) < 1e-3, (k, loss_dict[k + '_loss'], ref[k])
        assert len(loss_dict[k + '_loss_scale']) == len(scales)
    print("KERNEL_OK")
</pallas_src>

<mosaic_0001>
module attributes {stable_mosaic.version = 11 : i64} {
  func.func @kernel(%arg0: i32, %arg1: i32, %arg2: i32, %arg3: memref<1x2x2x128xf32, #tpu.memory_space<vmem>>, %arg4: memref<1x2x2x128xf32, #tpu.memory_space<vmem>>, %arg5: memref<1x3x2x128xf32, #tpu.memory_space<vmem>>, %arg6: memref<1x3x2x128xf32, #tpu.memory_space<vmem>>, %arg7: memref<1x1x2x128xf32, #tpu.memory_space<vmem>>, %arg8: memref<1x1x2x128xf32, #tpu.memory_space<vmem>>, %arg9: memref<1x1x2x128xf32, #tpu.memory_space<vmem>>, %arg10: memref<1x1x1x1xf32, #tpu.memory_space<vmem>>, %arg11: memref<1x1x1x1xf32, #tpu.memory_space<vmem>>, %arg12: memref<1x1x1x1xf32, #tpu.memory_space<vmem>>, %arg13: memref<1x1x1x1xf32, #tpu.memory_space<vmem>>, %arg14: memref<2x128xf32, #tpu.memory_space<vmem>>, %arg15: memref<2x128xf32, #tpu.memory_space<vmem>>, %arg16: memref<2x128xf32, #tpu.memory_space<vmem>>, %arg17: memref<2x128xf32, #tpu.memory_space<vmem>>) attributes {dimension_semantics = [#tpu.dimension_semantics<parallel>, #tpu.dimension_semantics<parallel>, #tpu.dimension_semantics<arbitrary>], iteration_bounds = array<i64: 2, 2, 1>, scalar_prefetch = 0 : i64, scratch_operands = 4 : i64, tpu.core_type = #tpu.core_type<tc>, window_params = [{transform_indices = @transform_0, window_bounds = array<i64: 1, 2, 2, 128>}, {transform_indices = @transform_1, window_bounds = array<i64: 1, 2, 2, 128>}, {transform_indices = @transform_2, window_bounds = array<i64: 1, 3, 2, 128>}, {transform_indices = @transform_3, window_bounds = array<i64: 1, 3, 2, 128>}, {transform_indices = @transform_4, window_bounds = array<i64: 1, 1, 2, 128>}, {transform_indices = @transform_5, window_bounds = array<i64: 1, 1, 2, 128>}, {transform_indices = @transform_6, window_bounds = array<i64: 1, 1, 2, 128>}, {transform_indices = @transform_7, window_bounds = array<i64: 1, 1, 1, 1>}, {transform_indices = @transform_8, window_bounds = array<i64: 1, 1, 1, 1>}, {transform_indices = @transform_9, window_bounds = array<i64: 1, 1, 1, 1>}, {transform_indices = @transform_10, window_bounds = array<i64: 1, 1, 1, 1>}]} {
    %c0_i32 = arith.constant 0 : i32
    %0 = arith.cmpi eq, %arg2, %c0_i32 : i32
    %1 = arith.extui %0 : i1 to i32
    %c0_i32_0 = arith.constant 0 : i32
    %2 = arith.cmpi ne, %1, %c0_i32_0 : i32
    scf.if %2 {
      %cst_53 = arith.constant 0.000000e+00 : f32
      %57 = vector.broadcast %cst_53 : f32 to vector<2x128xf32>
      %c0_54 = arith.constant 0 : index
      %c0_55 = arith.constant 0 : index
      %58 = vector.load %arg14[%c0_54, %c0_55] : memref<2x128xf32, #tpu.memory_space<vmem>>, vector<2x128xf32>
      tpu.vector_store %arg14[%c0_54, %c0_55], %57 {strides = array<i32>} : memref<2x128xf32, #tpu.memory_space<vmem>>, vector<2x128xf32>,
      %cst_56 = arith.constant 0.000000e+00 : f32
      %59 = vector.broadcast %cst_56 : f32 to vector<2x128xf32>
      %c0_57 = arith.constant 0 : index
      %c0_58 = arith.constant 0 : index
      %60 = vector.load %arg15[%c0_57, %c0_58] : memref<2x128xf32, #tpu.memory_space<vmem>>, vector<2x128xf32>
      tpu.vector_store %arg15[%c0_57, %c0_58], %59 {strides = array<i32>} : memref<2x128xf32, #tpu.memory_space<vmem>>, vector<2x128xf32>,
      %cst_59 = arith.constant 0.000000e+00 : f32
      %61 = vector.broadcast %cst_59 : f32 to vector<2x128xf32>
      %c0_60 = arith.constant 0 : index
      %c0_61 = arith.constant 0 : index
      %62 = vector.load %arg16[%c0_60, %c0_61] : memref<2x128xf32, #tpu.memory_space<vmem>>, vector<2x128xf32>
      tpu.vector_store %arg16[%c0_60, %c0_61], %61 {strides = array<i32>} : memref<2x128xf32, #tpu.memory_space<vmem>>, vector<2x128xf32>,
      %cst_62 = arith.constant 0.000000e+00 : f32
      %63 = vector.broadcast %cst_62 : f32 to vector<2x128xf32>
      %c0_63 = arith.constant 0 : index
      %c0_64 = arith.constant 0 : index
      %64 = vector.load %arg17[%c0_63, %c0_64] : memref<2x128xf32, #tpu.memory_space<vmem>>, vector<2x128xf32>
      tpu.vector_store %arg17[%c0_63, %c0_64], %63 {strides = array<i32>} : memref<2x128xf32, #tpu.memory_space<vmem>>, vector<2x128xf32>,
    } else {
    }
    %c0 = arith.constant 0 : index
    %c0_1 = arith.constant 0 : index
    %c0_2 = arith.constant 0 : index
    %c0_3 = arith.constant 0 : index
    %3 = vector.load %arg9[%c0, %c0_1, %c0_2, %c0_3] : memref<1x1x2x128xf32, #tpu.memory_space<vmem>>, vector<1x1x2x128xf32>
    %4 = vector.shape_cast %3 : vector<1x1x2x128xf32> to vector<2x128xf32>
    %c1_i32 = arith.constant 1 : i32
    %5 = arith.muli %arg1, %c1_i32 : i32
    %6 = arith.addi %5, %arg2 : i32
    %c2_i32 = arith.constant 2 : i32
    %7 = arith.muli %6, %c2_i32 : i32
    %8 = tpu.iota {dimensions = array<i32: 0>} : vector<2x128xi32>
    %9 = vector.broadcast %7 : i32 to vector<2x128xi32>
    %10 = arith.addi %9, %8 : vector<2x128xi32>
    %c2_i32_4 = arith.constant 2 : i32
    %11 = vector.broadcast %c2_i32_4 : i32 to vector<2x128xi32>
    %12 = arith.cmpi slt, %10, %11 : vector<2x128xi32>
    %cst = arith.constant 0.000000e+00 : f32
    %13 = vector.broadcast %cst : f32 to vector<2x128xf32>
    %14 = arith.select %12, %4, %13 : vector<2x128xi1>, vector<2x128xf32>
    %c0_5 = arith.constant 0 : index
    %c0_6 = arith.constant 0 : index
    %15 = vector.load %arg17[%c0_5, %c0_6] : memref<2x128xf32, #tpu.memory_space<vmem>>, vector<2x128xf32>
    %16 = arith.addf %15, %14 : vector<2x128xf32>
    %c0_7 = arith.constant 0 : index
    %c0_8 = arith.constant 0 : index
    %17 = vector.load %arg17[%c0_7, %c0_8] : memref<2x128xf32, #tpu.memory_space<vmem>>, vector<2x128xf32>
    tpu.vector_store %arg17[%c0_7, %c0_8], %16 {strides = array<i32>} : memref<2x128xf32, #tpu.memory_space<vmem>>, vector<2x128xf32>,
    %c0_9 = arith.constant 0 : index
    %c0_10 = arith.constant 0 : index
    %c0_11 = arith.constant 0 : index
    %c0_12 = arith.constant 0 : index
    %18 = vector.load %arg3[%c0_9, %c0_10, %c0_11, %c0_12] : memref<1x2x2x128xf32, #tpu.memory_space<vmem>>, vector<1x2x2x128xf32>
    %c0_13 = arith.constant 0 : index
    %c0_14 = arith.constant 0 : index
    %c0_15 = arith.constant 0 : index
    %c0_16 = arith.constant 0 : index
    %19 = vector.load %arg4[%c0_13, %c0_14, %c0_15, %c0_16] : memref<1x2x2x128xf32, #tpu.memory_space<vmem>>, vector<1x2x2x128xf32>
    %20 = arith.subf %18, %19 : vector<1x2x2x128xf32>
    %21 = math.absf %20 : vector<1x2x2x128xf32>
    %cst_17 = arith.constant dense<0.000000e+00> : vector<1x2x128xf32>
    %22 = vector.multi_reduction <add>, %21, %cst_17 [1] : vector<1x2x2x128xf32> to vector<1x2x128xf32>
    %23 = vector.shape_cast %22 : vector<1x2x128xf32> to vector<2x128xf32>
    %24 = arith.mulf %23, %14 : vector<2x128xf32>
    %cst_18 = arith.constant 0.000000e+00 : f32
    %25 = vector.broadcast %cst_18 : f32 to vector<2x128xf32>
    %26 = arith.select %12, %24, %25 : vector<2x128xi1>, vector<2x128xf32>
    %c0_19 = arith.constant 0 : index
    %c0_20 = arith.constant 0 : index
    %27 = vector.load %arg14[%c0_19, %c0_20] : memref<2x128xf32, #tpu.memory_space<vmem>>, vector<2x128xf32>
    %28 = arith.addf %27, %26 : vector<2x128xf32>
    %c0_21 = arith.constant 0 : index
    %c0_22 = arith.constant 0 : index
    %29 = vector.load %arg14[%c0_21, %c0_22] : memref<2x128xf32, #tpu.memory_space<vmem>>, vector<2x128xf32>
    tpu.vector_store %arg14[%c0_21, %c0_22], %28 {strides = array<i32>} : memref<2x128xf32, #tpu.memory_space<vmem>>, vector<2x128xf32>,
    %c0_23 = arith.constant 0 : index
    %c0_24 = arith.constant 0 : index
    %c0_25 = arith.constant 0 : index
    %c0_26 = arith.constant 0 : index
    %30 = vector.load %arg5[%c0_23, %c0_24, %c0_25, %c0_26] : memref<1x3x2x128xf32, #tpu.memory_space<vmem>>, vector<1x3x2x128xf32>
    %c0_27 = arith.constant 0 : index
    %c0_28 = arith.constant 0 : index
    %c0_29 = arith.constant 0 : index
    %c0_30 = arith.constant 0 : index
    %31 = vector.load %arg6[%c0_27, %c0_28, %c0_29, %c0_30] : memref<1x3x2x128xf32, #tpu.memory_space<vmem>>, vector<1x3x2x128xf32>
    %32 = arith.subf %30, %31 : vector<1x3x2x128xf32>
    %33 = math.absf %32 : vector<1x3x2x128xf32>
    %cst_31 = arith.constant dense<0.000000e+00> : vector<1x2x128xf32>
    %34 = vector.multi_reduction <add>, %33, %cst_31 [1] : vector<1x3x2x128xf32> to vector<1x2x128xf32>
    %35 = vector.shape_cast %34 : vector<1x2x128xf32> to vector<2x128xf32>
    %36 = arith.mulf %35, %14 : vector<2x128xf32>
    %cst_32 = arith.constant 0.000000e+00 : f32
    %37 = vector.broadcast %cst_32 : f32 to vector<2x128xf32>
    %38 = arith.select %12, %36, %37 : vector<2x128xi1>, vector<2x128xf32>
    %c0_33 = arith.constant 0 : index
    %c0_34 = arith.constant 0 : index
    %39 = vector.load %arg15[%c0_33, %c0_34] : memref<2x128xf32, #tpu.memory_space<vmem>>, vector<2x128xf32>
    %40 = arith.addf %39, %38 : vector<2x128xf32>
    %c0_35 = arith.constant 0 : index
    %c0_36 = arith.constant 0 : index
    %41 = vector.load %arg15[%c0_35, %c0_36] : memref<2x128xf32, #tpu.memory_space<vmem>>, vector<2x128xf32>
    tpu.vector_store %arg15[%c0_35, %c0_36], %40 {strides = array<i32>} : memref<2x128xf32, #tpu.memory_space<vmem>>, vector<2x128xf32>,
    %c0_37 = arith.constant 0 : index
    %c0_38 = arith.constant 0 : index
    %c0_39 = arith.constant 0 : index
    %c0_40 = arith.constant 0 : index
    %42 = vector.load %arg7[%c0_37, %c0_38, %c0_39, %c0_40] : memref<1x1x2x128xf32, #tpu.memory_space<vmem>>, vector<1x1x2x128xf32>
    %c0_41 = arith.constant 0 : index
    %c0_42 = arith.constant 0 : index
    %c0_43 = arith.constant 0 : index
    %c0_44 = arith.constant 0 : index
    %43 = vector.load %arg8[%c0_41, %c0_42, %c0_43, %c0_44] : memref<1x1x2x128xf32, #tpu.memory_space<vmem>>, vector<1x1x2x128xf32>
    %44 = arith.subf %42, %43 : vector<1x1x2x128xf32>
    %45 = math.absf %44 : vector<1x1x2x128xf32>
    %cst_45 = arith.constant dense<0.000000e+00> : vector<1x2x128xf32>
    %46 = vector.multi_reduction <add>, %45, %cst_45 [1] : vector<1x1x2x128xf32> to vector<1x2x128xf32>
    %47 = vector.shape_cast %46 : vector<1x2x128xf32> to vector<2x128xf32>
    %48 = arith.mulf %47, %14 : vector<2x128xf32>
    %cst_46 = arith.constant 0.000000e+00 : f32
    %49 = vector.broadcast %cst_46 : f32 to vector<2x128xf32>
    %50 = arith.select %12, %48, %49 : vector<2x128xi1>, vector<2x128xf32>
    %c0_47 = arith.constant 0 : index
    %c0_48 = arith.constant 0 : index
    %51 = vector.load %arg16[%c0_47, %c0_48] : memref<2x128xf32, #tpu.memory_space<vmem>>, vector<2x128xf32>
    %52 = arith.addf %51, %50 : vector<2x128xf32>
    %c0_49 = arith.constant 0 : index
    %c0_50 = arith.constant 0 : index
    %53 = vector.load %arg16[%c0_49, %c0_50] : memref<2x128xf32, #tpu.memory_space<vmem>>, vector<2x128xf32>
    tpu.vector_store %arg16[%c0_49, %c0_50], %52 {strides = array<i32>} : memref<2x128xf32, #tpu.memory_space<vmem>>, vector<2x128xf32>,
    %c0_i32_51 = arith.constant 0 : i32
    %54 = arith.cmpi eq, %arg2, %c0_i32_51 : i32
    %55 = arith.extui %54 : i1 to i32
    %c0_i32_52 = arith.constant 0 : i32
    %56 = arith.cmpi ne, %55, %c0_i32_52 : i32
    scf.if %56 {
      %c0_53 = arith.constant 0 : index
      %c0_54 = arith.constant 0 : index
      %57 = vector.load %arg14[%c0_53, %c0_54] : memref<2x128xf32, #tpu.memory_space<vmem>>, vector<2x128xf32>
      %58 = vector.shape_cast %57 : vector<2x128xf32> to vector<1x2x128xf32>
      %cst_55 = arith.constant dense<0.000000e+00> : vector<1xf32>
      %59 = vector.multi_reduction <add>, %58, %cst_55 [1, 2] : vector<1x2x128xf32> to vector<1xf32>
      %60 = vector.shape_cast %59 : vector<1xf32> to vector<1x1x1xf32>
      %61 = vector.extract %60[0, 0, 0] : f32 from vector<1x1x1xf32>
      %62 = vector.broadcast %61 : f32 to vector<1x1x1x1xf32>
      %c0_56 = arith.constant 0 : index
      %c0_57 = arith.constant 0 : index
      %c0_58 = arith.constant 0 : index
      %c0_59 = arith.constant 0 : index
      %63 = vector.load %arg10[%c0_56, %c0_57, %c0_58, %c0_59] : memref<1x1x1x1xf32, #tpu.memory_space<vmem>>, vector<1x1x1x1xf32>
      tpu.vector_store %arg10[%c0_56, %c0_57, %c0_58, %c0_59], %62 {strides = array<i32>} : memref<1x1x1x1xf32, #tpu.memory_space<vmem>>, vector<1x1x1x1xf32>,
      %c0_60 = arith.constant 0 : index
      %c0_61 = arith.constant 0 : index
      %64 = vector.load %arg15[%c0_60, %c0_61] : memref<2x128xf32, #tpu.memory_space<vmem>>, vector<2x128xf32>
      %65 = vector.shape_cast %64 : vector<2x128xf32> to vector<1x2x128xf32>
      %cst_62 = arith.constant dense<0.000000e+00> : vector<1xf32>
      %66 = vector.multi_reduction <add>, %65, %cst_62 [1, 2] : vector<1x2x128xf32> to vector<1xf32>
      %67 = vector.shape_cast %66 : vector<1xf32> to vector<1x1x1xf32>
      %68 = vector.extract %67[0, 0, 0] : f32 from vector<1x1x1xf32>
      %69 = vector.broadcast %68 : f32 to vector<1x1x1x1xf32>
      %c0_63 = arith.constant 0 : index
      %c0_64 = arith.constant 0 : index
      %c0_65 = arith.constant 0 : index
      %c0_66 = arith.constant 0 : index
      %70 = vector.load %arg11[%c0_63, %c0_64, %c0_65, %c0_66] : memref<1x1x1x1xf32, #tpu.memory_space<vmem>>, vector<1x1x1x1xf32>
      tpu.vector_store %arg11[%c0_63, %c0_64, %c0_65, %c0_66], %69 {strides = array<i32>} : memref<1x1x1x1xf32, #tpu.memory_space<vmem>>, vector<1x1x1x1xf32>,
      %c0_67 = arith.constant 0 : index
      %c0_68 = arith.constant 0 : index
      %71 = vector.load %arg16[%c0_67, %c0_68] : memref<2x128xf32, #tpu.memory_space<vmem>>, vector<2x128xf32>
      %72 = vector.shape_cast %71 : vector<2x128xf32> to vector<1x2x128xf32>
      %cst_69 = arith.constant dense<0.000000e+00> : vector<1xf32>
      %73 = vector.multi_reduction <add>, %72, %cst_69 [1, 2] : vector<1x2x128xf32> to vector<1xf32>
      %74 = vector.shape_cast %73 : vector<1xf32> to vector<1x1x1xf32>
      %75 = vector.extract %74[0, 0, 0] : f32 from vector<1x1x1xf32>
      %76 = vector.broadcast %75 : f32 to vector<1x1x1x1xf32>
      %c0_70 = arith.constant 0 : index
      %c0_71 = arith.constant 0 : index
      %c0_72 = arith.constant 0 : index
      %c0_73 = arith.constant 0 : index
      %77 = vector.load %arg12[%c0_70, %c0_71, %c0_72, %c0_73] : memref<1x1x1x1xf32, #tpu.memory_space<vmem>>, vector<1x1x1x1xf32>
      tpu.vector_store %arg12[%c0_70, %c0_71, %c0_72, %c0_73], %76 {strides = array<i32>} : memref<1x1x1x1xf32, #tpu.memory_space<vmem>>, vector<1x1x1x1xf32>,
      %c0_74 = arith.constant 0 : index
      %c0_75 = arith.constant 0 : index
      %78 = vector.load %arg17[%c0_74, %c0_75] : memref<2x128xf32, #tpu.memory_space<vmem>>, vector<2x128xf32>
      %79 = vector.shape_cast %78 : vector<2x128xf32> to vector<1x2x128xf32>
      %cst_76 = arith.constant dense<0.000000e+00> : vector<1xf32>
      %80 = vector.multi_reduction <add>, %79, %cst_76 [1, 2] : vector<1x2x128xf32> to vector<1xf32>
      %81 = vector.shape_cast %80 : vector<1xf32> to vector<1x1x1xf32>
      %82 = vector.extract %81[0, 0, 0] : f32 from vector<1x1x1xf32>
      %83 = vector.broadcast %82 : f32 to vector<1x1x1x1xf32>
      %c0_77 = arith.constant 0 : index
      %c0_78 = arith.constant 0 : index
      %c0_79 = arith.constant 0 : index
      %c0_80 = arith.constant 0 : index
      %84 = vector.load %arg13[%c0_77, %c0_78, %c0_79, %c0_80] : memref<1x1x1x1xf32, #tpu.memory_space<vmem>>, vector<1x1x1x1xf32>
      tpu.vector_store %arg13[%c0_77, %c0_78, %c0_79, %c0_80], %83 {strides = array<i32>} : memref<1x1x1x1xf32, #tpu.memory_space<vmem>>, vector<1x1x1x1xf32>,
    } else {
    }
    return
  }
  func.func @transform_0(%arg0: i32, %arg1: i32, %arg2: i32) -> (i32, i32, i32, i32) {
    %c1_i32 = arith.constant 1 : i32
    %0 = arith.muli %arg1, %c1_i32 : i32
    %1 = arith.addi %0, %arg2 : i32
    %c0_i32 = arith.constant 0 : i32
    %2 = arith.minsi %1, %c0_i32 : i32
    %c0_i32_0 = arith.constant 0 : i32
    %c0_i32_1 = arith.constant 0 : i32
    %c0_i32_2 = arith.constant 0 : i32
    return %arg0, %c0_i32_0, %2, %c0_i32_1 : i32, i32, i32, i32
  }
  func.func @transform_1(%arg0: i32, %arg1: i32, %arg2: i32) -> (i32, i32, i32, i32) {
    %c1_i32 = arith.constant 1 : i32
    %0 = arith.muli %arg1, %c1_i32 : i32
    %1 = arith.addi %0, %arg2 : i32
    %c0_i32 = arith.constant 0 : i32
    %2 = arith.minsi %1, %c0_i32 : i32
    %c0_i32_0 = arith.constant 0 : i32
    %c0_i32_1 = arith.constant 0 : i32
    %c0_i32_2 = arith.constant 0 : i32
    return %arg0, %c0_i32_0, %2, %c0_i32_1 : i32, i32, i32, i32
  }
  func.func @transform_2(%arg0: i32, %arg1: i32, %arg2: i32) -> (i32, i32, i32, i32) {
    %c1_i32 = arith.constant 1 : i32
    %0 = arith.muli %arg1, %c1_i32 : i32
    %1 = arith.addi %0, %arg2 : i32
    %c0_i32 = arith.constant 0 : i32
    %2 = arith.minsi %1, %c0_i32 : i32
    %c0_i32_0 = arith.constant 0 : i32
    %c0_i32_1 = arith.constant 0 : i32
    %c0_i32_2 = arith.constant 0 : i32
    return %arg0, %c0_i32_0, %2, %c0_i32_1 : i32, i32, i32, i32
  }
  func.func @transform_3(%arg0: i32, %arg1: i32, %arg2: i32) -> (i32, i32, i32, i32) {
    %c1_i32 = arith.constant 1 : i32
    %0 = arith.muli %arg1, %c1_i32 : i32
    %1 = arith.addi %0, %arg2 : i32
    %c0_i32 = arith.constant 0 : i32
    %2 = arith.minsi %1, %c0_i32 : i32
    %c0_i32_0 = arith.constant 0 : i32
    %c0_i32_1 = arith.constant 0 : i32
    %c0_i32_2 = arith.constant 0 : i32
    return %arg0, %c0_i32_0, %2, %c0_i32_1 : i32, i32, i32, i32
  }
  func.func @transform_4(%arg0: i32, %arg1: i32, %arg2: i32) -> (i32, i32, i32, i32) {
    %c1_i32 = arith.constant 1 : i32
    %0 = arith.muli %arg1, %c1_i32 : i32
    %1 = arith.addi %0, %arg2 : i32
    %c0_i32 = arith.constant 0 : i32
    %2 = arith.minsi %1, %c0_i32 : i32
    %c0_i32_0 = arith.constant 0 : i32
    %c0_i32_1 = arith.constant 0 : i32
    %c0_i32_2 = arith.constant 0 : i32
    return %arg0, %c0_i32_0, %2, %c0_i32_1 : i32, i32, i32, i32
  }
  func.func @transform_5(%arg0: i32, %arg1: i32, %arg2: i32) -> (i32, i32, i32, i32) {
    %c1_i32 = arith.constant 1 : i32
    %0 = arith.muli %arg1, %c1_i32 : i32
    %1 = arith.addi %0, %arg2 : i32
    %c0_i32 = arith.constant 0 : i32
    %2 = arith.minsi %1, %c0_i32 : i32
    %c0_i32_0 = arith.constant 0 : i32
    %c0_i32_1 = arith.constant 0 : i32
    %c0_i32_2 = arith.constant 0 : i32
    return %arg0, %c0_i32_0, %2, %c0_i32_1 : i32, i32, i32, i32
  }
  func.func @transform_6(%arg0: i32, %arg1: i32, %arg2: i32) -> (i32, i32, i32, i32) {
    %c1_i32 = arith.constant 1 : i32
    %0 = arith.muli %arg1, %c1_i32 : i32
    %1 = arith.addi %0, %arg2 : i32
    %c0_i32 = arith.constant 0 : i32
    %2 = arith.minsi %1, %c0_i32 : i32
    %c0_i32_0 = arith.constant 0 : i32
    %c0_i32_1 = arith.constant 0 : i32
    %c0_i32_2 = arith.constant 0 : i32
    return %arg0, %c0_i32_0, %2, %c0_i32_1 : i32, i32, i32, i32
  }
  func.func @transform_7(%arg0: i32, %arg1: i32, %arg2: i32) -> (i32, i32, i32, i32) {
    %c0_i32 = arith.constant 0 : i32
    %c0_i32_0 = arith.constant 0 : i32
    %c0_i32_1 = arith.constant 0 : i32
    return %arg0, %arg1, %c0_i32, %c0_i32_0 : i32, i32, i32, i32
  }
  func.func @transform_8(%arg0: i32, %arg1: i32, %arg2: i32) -> (i32, i32, i32, i32) {
    %c0_i32 = arith.constant 0 : i32
    %c0_i32_0 = arith.constant 0 : i32
    %c0_i32_1 = arith.constant 0 : i32
    return %arg0, %arg1, %c0_i32, %c0_i32_0 : i32, i32, i32, i32
  }
  func.func @transform_9(%arg0: i32, %arg1: i32, %arg2: i32) -> (i32, i32, i32, i32) {
    %c0_i32 = arith.constant 0 : i32
    %c0_i32_0 = arith.constant 0 : i32
    %c0_i32_1 = arith.constant 0 : i32
    return %arg0, %arg1, %c0_i32, %c0_i32_0 : i32, i32, i32, i32
  }
  func.func @transform_10(%arg0: i32, %arg1: i32, %arg2: i32) -> (i32, i32, i32, i32) {
    %c0_i32 = arith.constant 0 : i32
    %c0_i32_0 = arith.constant 0 : i32
    %c0_i32_1 = arith.constant 0 : i32
    return %arg0, %arg1, %c0_i32, %c0_i32_0 : i32, i32, i32, i32
  }
}

</mosaic_0001>

<bundles_post_ra>
// kernel: _fused_masked_l1.1
= control target key start
LH: loop header
LB: loop body
LE: loop exit
PB: predicated region body
PF: predicated region fallthrough
CT: control target
= control target key end

     0   :  { %s1391_s13 = smov 0   ;;  %s1393_s14 = smov 0   ;;  %s1501_s0 = inlined_call_operand.vmem [shape: f32[2,3,2,128], index: 0, kind: input, shape index: {}]   ;;  %s1502_s1 = inlined_call_operand.vmem [shape: f32[2,3,2,128], index: 1, kind: input, shape index: {}]   ;;  %s1503_s2 = inlined_call_operand.vmem [shape: f32[2,3,2,128], index: 2, kind: input, shape index: {}]   ;;  %s1504_s3 = inlined_call_operand.vmem [shape: f32[2,3,2,128], index: 3, kind: input, shape index: {}]   ;;  %s1505_s4 = inlined_call_operand.vmem [shape: f32[2,1,2,128], index: 4, kind: input, shape index: {}]   ;;  %s1506_s5 = inlined_call_operand.vmem [shape: f32[2,1,2,128], index: 5, kind: input, shape index: {}]   ;;  %s1507_s6 = inlined_call_operand.vmem [shape: f32[2,1,2,128], index: 6, kind: input, shape index: {}]   ;;  %s1508_s7 = inlined_call_operand.vmem [shape: f32[2,2,1,1], index: 7, kind: output, shape index: {0}]   ;;  %s1509_s8 = inlined_call_operand.vmem [shape: f32[2,2,1,1], index: 8, kind: output, shape index: {1}]   ;;  %s1510_s9 = inlined_call_operand.vmem [shape: f32[2,2,1,1], index: 9, kind: output, shape index: {2}]   ;;  %s1511_s10 = inlined_call_operand.vmem [shape: f32[2,2,1,1], index: 10, kind: output, shape index: {3}]  }
   0x1   :  { %s1395_s15 = smov 0   ;;  %s1397_s16 = smov 0  }
   0x2   :  { %s1399_s17 = smov 0  }
   0x3 LB: > { %s36_s18 = sadd.s32 1, %s1325_s15  ;;  %s40_s19 = sadd.s32 1, %s1329_s16  ;;  %s1333_s17 = sphi %s1399_s17, %s21_s17   ;;  %s1329_s16 = sphi %s1397_s16, %s1519_s16   ;;  %s1325_s15 = sphi %s1395_s15, %s1518_s15   ;;  %s1321_s14 = sphi %s1393_s14, %s1517_s14   ;;  %s1317_s13 = sphi %s1391_s13, %s1516_s13  }
   0x4   : > { %p38_p0 = scmp.ge.s32.totalorder %s36_s18, 2  ;;  %p1209_p1 = scmp.ge.s32.totalorder %s1333_s17, 1 }
   0x5   : > { %p522_p2 = scmp.lt.s32.totalorder %s1333_s17, 5 }
   0x6   : > { %s1521_s18 = smov (%p38_p0, %s36_s18), 0  ;;  %s1523_s19 = smov (!%p38_p0, %s40_s19), %s1329_s16 }
   0x7   : > { %1512 = sst [smem:[#allocation6_spill]] %s1521_s18  ;;  %p523_p3 = pnand %p1209_p1, %p522_p2 }
   0x8   : > { %p42_p4 = scmp.ge.s32.totalorder %s1523_s19, 2  ;;  %p653_p5 = scmp.lt.s32.totalorder (!%p523_p3), %s1317_s13, 0 }
   0x9   : > { %526 = sbr.rel (%p523_p3) target bundleno = 236 (0xec), region = 48  ;;  %p655_p6 = scmp.lt.s32.totalorder (!%p523_p3), %s1321_s14, 1 }
   0xa   : > { %s1525_s19 = smov (%p42_p4, %s1523_s19), 0  ;;  %s1242_s20 = sshll.u32 (!%p523_p3), %s1317_s13, 1 }
   0xb   : > { %1513 = sst [smem:[#allocation7_spill]] %s1525_s19  ;;  %p749_p7 = scmp.lt.s32.totalorder (!%p523_p3), %s1317_s13, 1 }
   0xe   : > { %v786_v0 = vlaneseq  ;;  %v1335_v1 = vmov 0.0   ;;  %s654_s21 = scalar_select %p653_p5, %s1317_s13, 0  ;;  %v788_v3 = vstv %s1242_s20  ;;  %vm803_vm1 = vcmask 1041408  }
   0xf   : > { %781 = vst [vmem:[#allocation4] sm:$0x3] %v1335_v1  ;;  %s1527_s14 = smov (!%p655_p6, %s1321_s14), 1  ;;  %s1531_s13 = smov (!%p749_p7, %s1317_s13), 1  ;;  %vm859_vm2 = vcmask 0  }
  0x10   : > { %v787_v2 = vshrl.u32 %v786_v0, 7  ;;  %779 = vst [vmem:[#allocation2] sm:$0x3] %v1335_v1  ;;  %s1529_s21 = smov (!%p653_p5, %s654_s21), 0  ;;  %s1245_s22 = smul.u32 3, %s1527_s14 }
  0x11   : > { %780 = vst [vmem:[#allocation3] sm:$0x3] %v1335_v1  ;;  %s715_s23 = sadd.s32 %s1529_s21, %s1527_s14 }
  0x12   : > { %v1428_v4 = vadd.s32 %v788_v3, %v787_v2  ;;  %782 = vst [vmem:[#allocation5] sm:$0x3] %v1335_v1  ;;  %s1229_s24 = sshll.u32 %s715_s23, 1  ;;  %s660_s25 = sadd.s32 %s1245_s22, %s1529_s21 }
  0x13   : > { %s717_s28 = scalar_lea.vmem %s1505_s4, %s1229_s24  ;;  %s730_s11 = scalar_lea.vmem %s1506_s5, %s1229_s24 }
  0x14   : > { %vm790_vm0 = vcmp.lt.s32.totalorder %v1428_v4, 2  ;;  %s743_s19 = scalar_lea.vmem %s1507_s6, %s1229_s24  ;;  %v834_v5 = vld [vmem:[%s717_s28] sm:$0x3]  ;;  %s1213_s18 = sshll.u32 %s660_s25, 1 }
  0x15   : > { %v835_v6 = vld [vmem:[%s730_s11] sm:$0x3]  ;;  %s662_s23 = scalar_lea.vmem %s1501_s0, %s1213_s18  ;;  %s676_s29 = scalar_lea.vmem %s1502_s1, %s1213_s18 }
  0x16   : > { %v783_v7 = vld [vmem:[%s743_s19] sm:$0x3]  ;;  %v836_v8 = vsub.f32 %v834_v5, %v835_v6  ;;  %s690_s24 = scalar_lea.vmem %s1503_s2, %s1213_s18  ;;  %s704_s19 = scalar_lea.vmem %s1504_s3, %s1213_s18  ;;  %v796_v11 = vld [vmem:[%s662_s23 + $0x2] sm:$0x3]  ;;  %v841_v13 = vld [vmem:[#allocation4] sm:$0x3] }
  0x17   : > { %v791_v9 = vsel %vm790_vm0, %v783_v7, 0.0  ;;  %v795_v10 = vld [vmem:[%s662_s23] sm:$0x3]  ;;  %v798_v15 = vld [vmem:[%s676_s29 + $0x2] sm:$0x3]  ;;  %s1238_s18 = sshll.u32 %s1527_s14, 1 }
  0x18   : > { %v837_v12 = vand.u32 2147483647, %v836_v8  ;;  %v797_v14 = vld [vmem:[%s676_s29] sm:$0x3]  ;;  %v800_v17 = vsub.f32 %v796_v11, %v798_v15  ;;  %v813_v19 = vld [vmem:[%s690_s24 + $0x2] sm:$0x3]  ;;  %s752_s11 = sadd.s32 %s1238_s18, %s1531_s13 }
  0x19   : > { %v799_v16 = vsub.f32 %v795_v10, %v797_v14  ;;  %v812_v18 = vld [vmem:[%s690_s24] sm:$0x3]  ;;  %v814_v20 = vld [vmem:[%s690_s24 + $0x4] sm:$0x3]  ;;  %v816_v23 = vld [vmem:[%s704_s19 + $0x2] sm:$0x3]  ;;  %s753_s22 = scalar_lea.vmem %s1508_s7, %s752_s11  ;;  %s760_s29 = scalar_lea.vmem %s1509_s8, %s752_s11 }
  0x1a   : > { %v839_v21 = vmul.f32 %v837_v12, %v791_v9  ;;  %v815_v22 = vld [vmem:[%s704_s19] sm:$0x3]  ;;  %v817_v24 = vld [vmem:[%s704_s19 + $0x4] sm:$0x3]  ;;  %v802_v26 = vand.u32 2147483647, %v800_v17  ;;  %v819_v28 = vsub.f32 %v813_v19, %v816_v23  ;;  %s767_s28 = scalar_lea.vmem %s1510_s9, %s752_s11  ;;  %s774_s19 = scalar_lea.vmem %s1511_s10, %s752_s11 }
  0x1b   : > { %v801_v25 = vand.u32 2147483647, %v799_v16  ;;  %v818_v27 = vsub.f32 %v812_v18, %v815_v22  ;;  %v792_v29 = vld [vmem:[#allocation5] sm:$0x3]  ;;  %v820_v31 = vsub.f32 %v814_v20, %v817_v24  ;;  %v809_v44 = vld [vmem:[#allocation2] sm:$0x3] }
  0x1c   : > { %v840_v30 = vsel %vm790_vm0, %v839_v21, 0.0  ;;  %v793_v32 = vadd.f32 %v792_v29, %v791_v9  ;;  %v805_v35 = vsel %vm803_vm1, %v802_v26, 0.0  ;;  %v822_v37 = vand.u32 2147483647, %v819_v28  ;;  %v831_v50 = vld [vmem:[#allocation3] sm:$0x3] }
  0x1d   : > { %v842_v33 = vadd.f32 %v841_v13, %v840_v30  ;;  %v804_v34 = vsel %vm803_vm1, %v801_v25, 0.0  ;;  %v821_v36 = vand.u32 2147483647, %v818_v27  ;;  %v823_v38 = vand.u32 2147483647, %v820_v31 }
  0x1e   : > { %v806_v39 = vadd.f32 %v805_v35, %v804_v34  ;;  %794 = vst [vmem:[#allocation5] sm:$0x3] %v793_v32  ;;  %v825_v41 = vsel %vm803_vm1, %v822_v37, 0.0 }
  0x1f   : > { %843 = vst [vmem:[#allocation4] sm:$0x3] %v842_v33  ;;  %v824_v40 = vsel %vm803_vm1, %v821_v36, 0.0  ;;  %v827_v42 = vsel %vm803_vm1, %v823_v38, 0.0 }
  0x20   : > { %v807_v43 = vmul.f32 %v806_v39, %v791_v9  ;;  %v826_v45 = vadd.f32 %v825_v41, %v824_v40 }
  0x22   : > { %v808_v46 = vsel %vm790_vm0, %v807_v43, 0.0  ;;  %v828_v47 = vadd.f32 %v827_v42, %v826_v45 }
  0x23   : > { %v810_v48 = vadd.f32 %v809_v44, %v808_v46 }
  0x24   : > { %v829_v49 = vmul.f32 %v828_v47, %v791_v9 }
  0x25   : > { %811 = vst [vmem:[#allocation2] sm:$0x3] %v810_v48  ;;  %v887_v55 = vld [vmem:[#allocation5] sm:$0x3] }
  0x26   : > { %v874_v51 = vld [vmem:[#allocation4] sm:$0x3]  ;;  %v830_v53 = vsel %vm790_vm0, %v829_v49, 0.0  ;;  %v888_v58 = vsel %vm803_vm1, %v887_v55, 0.0 }
  0x27   : > { %v875_v52 = vsel %vm803_vm1, %v874_v51, 0.0  ;;  %v832_v54 = vadd.f32 %v831_v50, %v830_v53 }
  0x28   : > { %876 = vadd.xlane.f32.xlu1 %v875_v52 }
  0x29   : > { %833 = vst [vmem:[#allocation3] sm:$0x3] %v832_v54 }
  0x2c   : > { %v847_v56 = vld [vmem:[#allocation2] sm:$0x3] }
  0x2d   : > { %v848_v57 = vsel %vm803_vm1, %v847_v56, 0.0 }
  0x2e   : > { %849 = vadd.xlane.f32.xlu0 %v848_v57 }
  0x30   : > { %889 = vadd.xlane.f32.xlu1 %v888_v58  ;;  %v861_v59 = vld [vmem:[#allocation3] sm:$0x3] }
  0x31   : > { %v862_v60 = vsel %vm803_vm1, %v861_v59, 0.0 }
  0x36   : > { %863 = vadd.xlane.f32.xlu0 %v862_v60 }
  0x9b   : > { %v877_v61 = vpop.xlane.xlu1 %876 }
  0x9c   : > { %v878_v62 = vrot.slane %v877_v61, 4 }
  0x9e   : > { %v879_v4 = vadd.f32 %v878_v62, %v877_v61 }
  0xa0   : > { %v880_v8 = vrot.slane %v879_v4, 2 }
  0xa1   : > { %v850_v63 = vpop.xlane.xlu0 %849 }
  0xa2   : > { %v851_v0 = vrot.slane %v850_v63, 4  ;;  %v881_v15 = vadd.f32 %v880_v8, %v879_v4 }
  0xa3   : > { %v890_v1 = vpop.xlane.xlu1 %889 }
  0xa4   : > { %v852_v2 = vadd.f32 %v851_v0, %v850_v63  ;;  %v891_v3 = vrot.slane %v890_v1, 4  ;;  %v882_v19 = vrot.slane %v881_v15, 1 }
  0xa6   : > { %v853_v5 = vrot.slane %v852_v2, 2  ;;  %v892_v6 = vadd.f32 %v891_v3, %v890_v1  ;;  %v883_v23 = vadd.f32 %v882_v19, %v881_v15 }
  0xa8   : > { %v854_v7 = vadd.f32 %v853_v5, %v852_v2  ;;  %v893_v10 = vrot.slane %v892_v6, 2 }
  0xa9   : > { %v864_v9 = vpop.xlane.xlu0 %863 }
  0xaa   : > { %v865_v11 = vrot.slane %v864_v9, 4  ;;  %v855_v12 = vrot.slane %v854_v7, 1  ;;  %v894_v16 = vadd.f32 %v893_v10, %v892_v6 }
  0xac   : > { %v866_v13 = vadd.f32 %v865_v11, %v864_v9  ;;  %v856_v14 = vadd.f32 %v855_v12, %v854_v7  ;;  %v895_v21 = vrot.slane %v894_v16, 1 }
  0xae   : > { %v867_v17 = vrot.slane %v866_v13, 2  ;;  %1246 = vpush %v856_v14  ;;  %v896_v24 = vadd.f32 %v895_v21, %v894_v16 }
  0xb0   : > { %v868_v18 = vadd.f32 %v867_v17, %v866_v13 }
  0xb2   : > { %v869_v20 = vrot.slane %v868_v18, 1 }
  0xb4   : > { %v870_v22 = vadd.f32 %v869_v20, %v868_v18 }
  0xb6   : > { %1248 = vpush %v870_v22 }
  0xb7   : > { %1250 = vpush %v883_v23 }
  0xb8   : > { %1252 = vpush %v896_v24 }
  0xdf   : > { %s1247_s23 = spop %1246 }
  0xe0   : > { %v858_v25 = vstv %s1247_s23 }
  0xe1   : > { %860 = vst.msk [vmem:[%s753_s22] sm:$0x1] %vm859_vm2, %v858_v25 }
  0xe7   : > { %s1249_s30 = spop %1248 }
  0xe8   : > { %v872_v26 = vstv %s1249_s30  ;;  %s1251_s14 = spop %1250 }
  0xe9   : > { %873 = vst.msk [vmem:[%s760_s29] sm:$0x1] %vm859_vm2, %v872_v26  ;;  %v885_v27 = vstv %s1251_s14  ;;  %s1253_s18 = spop %1252 }
  0xea   : > { %886 = vst.msk [vmem:[%s767_s28] sm:$0x1] %vm859_vm2, %v885_v27  ;;  %v898_v28 = vstv %s1253_s18 }
  0xeb   : > { %899 = vst.msk [vmem:[%s774_s19] sm:$0x1] %vm859_vm2, %v898_v28 }
  0xec PF: > { %s21_s17 = sadd.s32 1, %s1333_s17   ;;  %s1514_s20 = sld [smem:[#allocation6_spill]] }
  0xed   : > { %p18_p8 = scmp.ge.s32.totalorder %s21_s17, 6   ;;  %s1515_s21 = sld [smem:[#allocation7_spill]] }
  0xee   : > { %s1516_s13 = smov %s1325_s15  ;;  %s1517_s14 = smov %s1329_s16 }
  0xef   :  { %20 = sbr.rel (!%p18_p8) target bundleno = 3 (0x3), region = 140 }
  0xf2   : > { %s1518_s15 = smov %s1514_s20 }
  0xf3   : > { %s1519_s16 = smov %s1515_s21 }

</bundles_post_ra>
